<compile_context>
chip_gen: v6e
topology: v6e:2x2x1
jax: 0.10.0
libtpu: 0.0.40
codegen_flags: <defaults>
</compile_context>

<pallas_src>
import functools

import jax
import jax.numpy as jnp
from jax.experimental import pallas as pl


def _context_gru_kernel(xh0_ref, h0_ref, w_ref, b_ref, hout_ref, *,
                        hidden_size, x_width, n_layers):
    """Single-timestep multi-layer GRU; all layers unrolled in one invocation."""
    H = hidden_size
    x = None
    for l in range(n_layers):                        # static unroll (n_layers small)
        h = h0_ref[l]                                # (1, H) previous hidden, layer l
        if l == 0:
            xh = xh0_ref[...]                        # (1, x_width + H) = [x_pad | h_0]
        else:
            parts = [x]
            if x_width > H:                          # unused x-slot lanes hit zero
                parts.append(jnp.zeros((1, x_width - H), jnp.float32))  # weight rows
            parts.append(h)
            xh = jnp.concatenate(parts, axis=-1)     # (1, x_width + H)

        # One fused MXU pass per layer; columns are [r | z | n_i | n_h].
        g = jnp.dot(xh, w_ref[l], preferred_element_type=jnp.float32) + b_ref[l]
        r = jax.nn.sigmoid(g[:, 0:H])                # b_ir + b_hr already folded
        z = jax.nn.sigmoid(g[:, H:2 * H])            # b_iz + b_hz already folded
        n = jnp.tanh(g[:, 2 * H:3 * H] + r * g[:, 3 * H:4 * H])
        h_new = (1.0 - z) * n + z * h

        hout_ref[l] = h_new                          # per-layer new hidden state
        # TODO(synk): nn.GRU inter-layer dropout acts only in training mode; this
        # is the eval-mode forward, so it is a no-op and omitted.
        x = h_new                                    # next layer's input (register)


def context_rnn_forward(inp, hidden, wcat, bias):
    """Forward of ContextRNN: input.view(1, 1, -1) -> multi-layer GRU, one step.

    inp:    any shape with E elements (viewed as (1, 1, E))
    hidden: (n_layers, 1, H)
    wcat:   (n_layers, x_width + H, 4H)  fused [W_ih^T ; W_hh^T] block weights
    bias:   (n_layers, 1, 4H)            folded biases [r | z | n_i | n_h]
    returns (output (1, 1, H), hidden (n_layers, 1, H))
    """
    n_layers, _, H = hidden.shape
    K = wcat.shape[1]
    x_width = K - H

    x = inp.reshape(1, -1).astype(jnp.float32)       # == input.view(1, 1, -1)
    E = x.shape[1]
    x_pad = jnp.pad(x, ((0, 0), (0, x_width - E)))
    xh0 = jnp.concatenate([x_pad, hidden[0]], axis=-1)   # (1, K), layer-0 [x | h]

    kernel = functools.partial(_context_gru_kernel, hidden_size=H,
                               x_width=x_width, n_layers=n_layers)

    h_out = pl.pallas_call(
        kernel,
        out_shape=jax.ShapeDtypeStruct((n_layers, 1, H), jnp.float32),
    )(xh0, hidden, wcat, bias)

    output = h_out[n_layers - 1].reshape(1, 1, H)    # GRU output == top-layer h
    return output, h_out


def init_gru_params(key, encoder_hidden_size, hidden_size, n_layers):
    """Deterministic init matching nn.GRU (U(-1/sqrt(H), 1/sqrt(H))) + packing."""
    E, H = encoder_hidden_size, hidden_size
    x_width = max(E, H)
    K = x_width + H
    bound = 1.0 / (H ** 0.5)

    raw = []                      # per-layer (w_ih (3H,Din), w_hh (3H,H), b_ih, b_hh)
    wcat_list, bias_list = [], []
    keys = jax.random.split(key, 4 * n_layers)
    for l in range(n_layers):
        d_in = E if l == 0 else H
        k0, k1, k2, k3 = keys[4 * l:4 * l + 4]
        w_ih = jax.random.uniform(k0, (3 * H, d_in), jnp.float32, -bound, bound)
        w_hh = jax.random.uniform(k1, (3 * H, H), jnp.float32, -bound, bound)
        b_ih = jax.random.uniform(k2, (3 * H,), jnp.float32, -bound, bound)
        b_hh = jax.random.uniform(k3, (3 * H,), jnp.float32, -bound, bound)
        raw.append((w_ih, w_hh, b_ih, b_hh))

        # Fused weight (K, 4H): rows [0:d_in] carry W_ih^T, rows [x_width:x_width+H]
        # carry W_hh^T; columns are [r | z | n_i | n_h].
        w = jnp.zeros((K, 4 * H), jnp.float32)
        w = w.at[0:d_in, 0:H].set(w_ih[0:H, :].T)               # W_ir
        w = w.at[0:d_in, H:2 * H].set(w_ih[H:2 * H, :].T)       # W_iz
        w = w.at[0:d_in, 2 * H:3 * H].set(w_ih[2 * H:3 * H, :].T)  # W_in
        w = w.at[x_width:x_width + H, 0:H].set(w_hh[0:H, :].T)             # W_hr
        w = w.at[x_width:x_width + H, H:2 * H].set(w_hh[H:2 * H, :].T)     # W_hz
        w = w.at[x_width:x_width + H, 3 * H:4 * H].set(w_hh[2 * H:3 * H, :].T)  # W_hn
        wcat_list.append(w)

        b = jnp.concatenate([
            b_ih[0:H] + b_hh[0:H],           # r gate bias (folded)
            b_ih[H:2 * H] + b_hh[H:2 * H],   # z gate bias (folded)
            b_ih[2 * H:3 * H],               # n gate input-side bias
            b_hh[2 * H:3 * H],               # n gate hidden-side bias (kept separate)
        ]).reshape(1, 4 * H)
        bias_list.append(b)

    packed = (jnp.stack(wcat_list), jnp.stack(bias_list))
    return packed, raw


def gru_reference(inp, hidden, raw_params):
    """Pure-JAX reference of the multi-layer single-step GRU (eval mode)."""
    hp = jax.lax.Precision.HIGHEST
    x = inp.reshape(1, -1)
    new_hidden = []
    for l, (w_ih, w_hh, b_ih, b_hh) in enumerate(raw_params):
        h = hidden[l]                          # (1, H)
        H = h.shape[-1]
        gi = jnp.dot(x, w_ih.T, precision=hp) + b_ih
        gh = jnp.dot(h, w_hh.T, precision=hp) + b_hh
        r = jax.nn.sigmoid(gi[:, :H] + gh[:, :H])
        z = jax.nn.sigmoid(gi[:, H:2 * H] + gh[:, H:2 * H])
        n = jnp.tanh(gi[:, 2 * H:] + r * gh[:, 2 * H:])
        h_new = (1.0 - z) * n + z * h
        new_hidden.append(h_new)
        x = h_new
    return x.reshape(1, 1, -1), jnp.stack(new_hidden)


if __name__ == "__main__":
    ENCODER_HIDDEN = 48   # encoder_hidden_size
    HIDDEN = 32           # hidden_size
    N_LAYERS = 2          # n_layers (dropout arg unused in eval forward)

    key = jax.random.PRNGKey(0)
    k_param, k_x, k_h = jax.random.split(key, 3)

    (wcat, bias), raw = init_gru_params(k_param, ENCODER_HIDDEN, HIDDEN, N_LAYERS)

    # Forward takes an input that is .view(1, 1, -1)'d and a hidden state shaped
    # like init_hidden(): (n_layers, 1, hidden_size).
    x = jax.random.normal(k_x, (ENCODER_HIDDEN,), jnp.float32)
    hidden = jax.random.normal(k_h, (N_LAYERS, 1, HIDDEN), jnp.float32)

    fwd = jax.jit(context_rnn_forward)
    out, hid = fwd(x, hidden, wcat, bias)
    out = jax.block_until_ready(out)
    hid = jax.block_until_ready(hid)

    out_ref, hid_ref = gru_reference(x, hidden, raw)
    assert out.shape == (1, 1, HIDDEN) and hid.shape == (N_LAYERS, 1, HIDDEN)
    assert jnp.allclose(out, out_ref, atol=1e-4, rtol=1e-4)
    assert jnp.allclose(hid, hid_ref, atol=1e-4, rtol=1e-4)

    print("KERNEL_OK")
</pallas_src>

<mosaic_0001>
module attributes {stable_mosaic.version = 11 : i64} {
  func.func @_context_gru_kernel(%arg0: memref<1x80xf32, #tpu.memory_space<vmem>>, %arg1: memref<2x1x32xf32, #tpu.memory_space<vmem>>, %arg2: memref<2x80x128xf32, #tpu.memory_space<vmem>>, %arg3: memref<2x1x128xf32, #tpu.memory_space<vmem>>, %arg4: memref<2x1x32xf32, #tpu.memory_space<vmem>>) attributes {dimension_semantics = [], scalar_prefetch = 0 : i64, scratch_operands = 0 : i64, tpu.core_type = #tpu.core_type<tc>} {
    %c0 = arith.constant 0 : index
    %c0_0 = arith.constant 0 : index
    %c0_1 = arith.constant 0 : index
    %0 = vector.load %arg1[%c0, %c0_0, %c0_1] : memref<2x1x32xf32, #tpu.memory_space<vmem>>, vector<1x1x32xf32>
    %1 = vector.shape_cast %0 : vector<1x1x32xf32> to vector<1x32xf32>
    %c0_2 = arith.constant 0 : index
    %c0_3 = arith.constant 0 : index
    %2 = vector.load %arg0[%c0_2, %c0_3] : memref<1x80xf32, #tpu.memory_space<vmem>>, vector<1x80xf32>
    %c0_4 = arith.constant 0 : index
    %c0_5 = arith.constant 0 : index
    %c0_6 = arith.constant 0 : index
    %3 = vector.load %arg2[%c0_4, %c0_5, %c0_6] : memref<2x80x128xf32, #tpu.memory_space<vmem>>, vector<1x80x128xf32>
    %4 = vector.shape_cast %3 : vector<1x80x128xf32> to vector<80x128xf32>
    %cst = arith.constant dense<0.000000e+00> : vector<1x128xf32>
    %5 = tpu.matmul %2, %4, %cst {dimension_numbers = #tpu.dot_dimension_numbers<[1], [0], [0], [1], [0, 0, 1, 1], [], []>} : vector<1x80xf32>, vector<80x128xf32>, vector<1x128xf32> -> vector<1x128xf32>
    %c0_7 = arith.constant 0 : index
    %c0_8 = arith.constant 0 : index
    %c0_9 = arith.constant 0 : index
    %6 = vector.load %arg3[%c0_7, %c0_8, %c0_9] : memref<2x1x128xf32, #tpu.memory_space<vmem>>, vector<1x1x128xf32>
    %7 = vector.shape_cast %6 : vector<1x1x128xf32> to vector<1x128xf32>
    %8 = arith.addf %5, %7 : vector<1x128xf32>
    %9 = vector.extract_strided_slice %8 {offsets = [0, 0], sizes = [1, 32], strides = [1, 1]} : vector<1x128xf32> to vector<1x32xf32>
    %10 = arith.negf %9 : vector<1x32xf32>
    %11 = math.exp %10 : vector<1x32xf32>
    %cst_10 = arith.constant 1.000000e+00 : f32
    %12 = vector.broadcast %cst_10 : f32 to vector<1x32xf32>
    %13 = arith.addf %12, %11 : vector<1x32xf32>
    %14 = arith.divf %12, %13 : vector<1x32xf32>
    %15 = vector.extract_strided_slice %8 {offsets = [0, 32], sizes = [1, 32], strides = [1, 1]} : vector<1x128xf32> to vector<1x32xf32>
    %16 = arith.negf %15 : vector<1x32xf32>
    %17 = math.exp %16 : vector<1x32xf32>
    %cst_11 = arith.constant 1.000000e+00 : f32
    %18 = vector.broadcast %cst_11 : f32 to vector<1x32xf32>
    %19 = arith.addf %18, %17 : vector<1x32xf32>
    %20 = arith.divf %18, %19 : vector<1x32xf32>
    %21 = vector.extract_strided_slice %8 {offsets = [0, 64], sizes = [1, 32], strides = [1, 1]} : vector<1x128xf32> to vector<1x32xf32>
    %22 = vector.extract_strided_slice %8 {offsets = [0, 96], sizes = [1, 32], strides = [1, 1]} : vector<1x128xf32> to vector<1x32xf32>
    %23 = arith.mulf %14, %22 : vector<1x32xf32>
    %24 = arith.addf %21, %23 : vector<1x32xf32>
    %25 = math.tanh %24 : vector<1x32xf32>
    %cst_12 = arith.constant 1.000000e+00 : f32
    %26 = vector.broadcast %cst_12 : f32 to vector<1x32xf32>
    %27 = arith.subf %26, %20 : vector<1x32xf32>
    %28 = arith.mulf %27, %25 : vector<1x32xf32>
    %29 = arith.mulf %20, %1 : vector<1x32xf32>
    %30 = arith.addf %28, %29 : vector<1x32xf32>
    %c0_13 = arith.constant 0 : index
    %c0_14 = arith.constant 0 : index
    %c0_15 = arith.constant 0 : index
    %31 = vector.load %arg4[%c0_13, %c0_14, %c0_15] : memref<2x1x32xf32, #tpu.memory_space<vmem>>, vector<1x1x32xf32>
    %32 = vector.shape_cast %31 : vector<1x1x32xf32> to vector<1x32xf32>
    %33 = vector.shape_cast %30 : vector<1x32xf32> to vector<1x1x32xf32>
    tpu.vector_store %arg4[%c0_13, %c0_14, %c0_15], %33 {strides = array<i32>} : memref<2x1x32xf32, #tpu.memory_space<vmem>>, vector<1x1x32xf32>,
    %c1 = arith.constant 1 : index
    %c0_16 = arith.constant 0 : index
    %c0_17 = arith.constant 0 : index
    %34 = vector.load %arg1[%c1, %c0_16, %c0_17] : memref<2x1x32xf32, #tpu.memory_space<vmem>>, vector<1x1x32xf32>
    %35 = vector.shape_cast %34 : vector<1x1x32xf32> to vector<1x32xf32>
    %cst_18 = arith.constant 0.000000e+00 : f32
    %36 = vector.broadcast %cst_18 : f32 to vector<1x16xf32>
    %37 = tpu.concatenate %30, %36, %35 in 1 : vector<1x32xf32>, vector<1x16xf32>, vector<1x32xf32> -> vector<1x80xf32>
    %c1_19 = arith.constant 1 : index
    %c0_20 = arith.constant 0 : index
    %c0_21 = arith.constant 0 : index
    %38 = vector.load %arg2[%c1_19, %c0_20, %c0_21] : memref<2x80x128xf32, #tpu.memory_space<vmem>>, vector<1x80x128xf32>
    %39 = vector.shape_cast %38 : vector<1x80x128xf32> to vector<80x128xf32>
    %cst_22 = arith.constant dense<0.000000e+00> : vector<1x128xf32>
    %40 = tpu.matmul %37, %39, %cst_22 {dimension_numbers = #tpu.dot_dimension_numbers<[1], [0], [0], [1], [0, 0, 1, 1], [], []>} : vector<1x80xf32>, vector<80x128xf32>, vector<1x128xf32> -> vector<1x128xf32>
    %c1_23 = arith.constant 1 : index
    %c0_24 = arith.constant 0 : index
    %c0_25 = arith.constant 0 : index
    %41 = vector.load %arg3[%c1_23, %c0_24, %c0_25] : memref<2x1x128xf32, #tpu.memory_space<vmem>>, vector<1x1x128xf32>
    %42 = vector.shape_cast %41 : vector<1x1x128xf32> to vector<1x128xf32>
    %43 = arith.addf %40, %42 : vector<1x128xf32>
    %44 = vector.extract_strided_slice %43 {offsets = [0, 0], sizes = [1, 32], strides = [1, 1]} : vector<1x128xf32> to vector<1x32xf32>
    %45 = arith.negf %44 : vector<1x32xf32>
    %46 = math.exp %45 : vector<1x32xf32>
    %cst_26 = arith.constant 1.000000e+00 : f32
    %47 = vector.broadcast %cst_26 : f32 to vector<1x32xf32>
    %48 = arith.addf %47, %46 : vector<1x32xf32>
    %49 = arith.divf %47, %48 : vector<1x32xf32>
    %50 = vector.extract_strided_slice %43 {offsets = [0, 32], sizes = [1, 32], strides = [1, 1]} : vector<1x128xf32> to vector<1x32xf32>
    %51 = arith.negf %50 : vector<1x32xf32>
    %52 = math.exp %51 : vector<1x32xf32>
    %cst_27 = arith.constant 1.000000e+00 : f32
    %53 = vector.broadcast %cst_27 : f32 to vector<1x32xf32>
    %54 = arith.addf %53, %52 : vector<1x32xf32>
    %55 = arith.divf %53, %54 : vector<1x32xf32>
    %56 = vector.extract_strided_slice %43 {offsets = [0, 64], sizes = [1, 32], strides = [1, 1]} : vector<1x128xf32> to vector<1x32xf32>
    %57 = vector.extract_strided_slice %43 {offsets = [0, 96], sizes = [1, 32], strides = [1, 1]} : vector<1x128xf32> to vector<1x32xf32>
    %58 = arith.mulf %49, %57 : vector<1x32xf32>
    %59 = arith.addf %56, %58 : vector<1x32xf32>
    %60 = math.tanh %59 : vector<1x32xf32>
    %cst_28 = arith.constant 1.000000e+00 : f32
    %61 = vector.broadcast %cst_28 : f32 to vector<1x32xf32>
    %62 = arith.subf %61, %55 : vector<1x32xf32>
    %63 = arith.mulf %62, %60 : vector<1x32xf32>
    %64 = arith.mulf %55, %35 : vector<1x32xf32>
    %65 = arith.addf %63, %64 : vector<1x32xf32>
    %c1_29 = arith.constant 1 : index
    %c0_30 = arith.constant 0 : index
    %c0_31 = arith.constant 0 : index
    %66 = vector.load %arg4[%c1_29, %c0_30, %c0_31] : memref<2x1x32xf32, #tpu.memory_space<vmem>>, vector<1x1x32xf32>
    %67 = vector.shape_cast %66 : vector<1x1x32xf32> to vector<1x32xf32>
    %68 = vector.shape_cast %65 : vector<1x32xf32> to vector<1x1x32xf32>
    tpu.vector_store %arg4[%c1_29, %c0_30, %c0_31], %68 {strides = array<i32>} : memref<2x1x32xf32, #tpu.memory_space<vmem>>, vector<1x1x32xf32>,
    return
  }
}

</mosaic_0001>

<bundles_post_ra>
// kernel: context_rnn_forward.1
= control target key start
LH: loop header
LB: loop body
LE: loop exit
PB: predicated region body
PF: predicated region fallthrough
CT: control target
= control target key end

     0   :  { %9 = vsyncpa [#allocation3], 0  ;;  %s416_s15 = smov [#allocation2]   ;;  %s510_s0 = inlined_call_operand.vmem [shape: f32[1,80], index: 0, kind: input, shape index: {}]   ;;  %s511_s1 = inlined_call_operand.vmem [shape: f32[2,1,32], index: 1, kind: input, shape index: {}]   ;;  %s512_s2 = inlined_call_operand.hbm [shape: f32[2,80,128], index: 2, kind: input, shape index: {}]   ;;  %s513_s3 = inlined_call_operand.vmem [shape: f32[2,1,128], index: 3, kind: input, shape index: {}]   ;;  %s514_s4 = inlined_call_operand.vmem [shape: f32[2,1,32], index: 4, kind: output, shape index: {}]  }
   0x1   :  { %s19_s16 = sshll.u32 %s416_s15, 4  ;;  %s20_s16 = int_to_ptr.vmem [resolvable:$true] %s19_s16 }
   0x2   :  { %s402_s17 = scalar_lea.vmem %s20_s16, 2560  ;;  %p407_p1 = scmp.lt.s32.totalorder %s20_s16, %s20_s16 }
   0x3   :  { %p403_p0 = scmp.ne.s32.totalorder %s20_s16, %s402_s17  ;;  %p408_p2 = scmp.lt.s32.totalorder %s402_s17, %s402_s17 }
   0x5   :  { %p409_p3 = por %p408_p2, %p407_p1 }
   0x7   :  { %p410_p4 = pnand %p409_p3, %p403_p0 }
   0x9   :  { %413 = shalt.err (!%p410_p4)
}
   0xa   :  { %s417_s18 = smov 128   ;;  %s418_s19 = smov 8  }
   0xb   :  { %25 = dma.hbm_to_vmem [thread:$0]  %s512_s2, 2560, %s20_s16, [#allocation3], %s417_s18, %s417_s18, %s418_s19  }
   0xc   :  { %414 = dma.done.wait [#allocation3], 2560  }
   0xd   :  { %415 = vsyncadd [#allocation3], 4294964736  ;;  %v419_v0 = vmov 0.0   ;;  %vm420_vm0 = vmmov 0   ;;  %v42_v1 = vld [vmem:[#allocation2 + $0x48] sm:$0xff]  ;;  %v41_v2 = vld [vmem:[#allocation2 + $0x40] sm:$0xff] }
   0xe   :  { %327 = vmatprep.subr.mxu0 %v419_v0  ;;  %347 = vmatprep.mubr.msk.f32.mxu0 %vm420_vm0, %v419_v0  ;;  %v40_v3 = vld [vmem:[#allocation2 + $0x38] sm:$0xff]  ;;  %v39_v4 = vld [vmem:[#allocation2 + $0x30] sm:$0xff]  ;;  %v38_v5 = vld [vmem:[#allocation2 + $0x28] sm:$0xff]  ;;  %vm44_vm1 = vcmask 654336   ;;  %s421_s25 = smov 32   ;;  %s423_s26 = smov 96  }
   0xf   :  { %350 = vmatprep.subr.mxu1 %v419_v0  ;;  %370 = vmatprep.mubr.msk.f32.mxu1 %vm420_vm0, %v419_v0  ;;  %v37_v6 = vld [vmem:[#allocation2 + $0x20] sm:$0xff]  ;;  %v36_v7 = vld [vmem:[#allocation2 + $0x18] sm:$0xff]  ;;  %v35_v8 = vld [vmem:[#allocation2 + $0x10] sm:$0xff]  ;;  %s424_s5 = smov 48   ;;  %vm155_vm2 = vcmask 253952   ;;  %vm167_vm3 = vcmask 261120  }
  0x10   :  { %328 = vmatpush3.msra.mxu0 %v42_v1  ;;  %v34_v9 = vld [vmem:[#allocation2 + $0x8] sm:$0xff]  ;;  %v33_v10 = vld [vmem:[#allocation2] sm:$0xff]  ;;  %v181_v24 = vld [vmem:[#allocation2 + $0x98] sm:$0xff]  ;;  %vm169_vm4 = vcmask 392192  }
  0x11   :  { %329 = vmatprep.subr.mxu0 %v419_v0  ;;  %v32_v11 = vld [vmem:[%s510_s0] sm:$0x1]  ;;  %s422_s0 = smov 64   ;;  %v180_v25 = vld [vmem:[#allocation2 + $0x90] sm:$0xff]  ;;  %351 = vmatpush3.msra.mxu1 %v181_v24  ;;  %v179_v26 = vld [vmem:[#allocation2 + $0x88] sm:$0xff] }
  0x12   :  { %330 = vmatpush3.msra.mxu0 %v41_v2  ;;  %v43_v12 = vld [vmem:[%s513_s3] sm:$0x1]  ;;  %352 = vmatprep.subr.mxu1 %v419_v0  ;;  %v177_v30 = vld [vmem:[#allocation2 + $0x78] sm:$0xff]  ;;  %v176_v31 = vld [vmem:[#allocation2 + $0x70] sm:$0xff] }
  0x13   :  { %331 = vmatprep.subr.mxu0 %v419_v0  ;;  %353 = vmatpush3.msra.mxu1 %v180_v25  ;;  %v178_v28 = vld [vmem:[#allocation2 + $0x80] sm:$0xff]  ;;  %v175_v33 = vld [vmem:[#allocation2 + $0x68] sm:$0xff]  ;;  %v173_v35 = vld [vmem:[#allocation2 + $0x58] sm:$0xff] }
  0x14   :  { %332 = vmatpush3.msra.mxu0 %v40_v3  ;;  %354 = vmatprep.subr.mxu1 %v419_v0  ;;  %v298_v29 = vld [vmem:[%s511_s1] ss:$0 sm:$0xff]  ;;  %v300_v32 = vld [vmem:[%s511_s1 + $0x1] ss:$0 sm:$0xff]  ;;  %v172_v36 = vld [vmem:[#allocation2 + $0x50] sm:$0xff] }
  0x15   :  { %333 = vmatprep.subr.mxu0 %v419_v0  ;;  %355 = vmatpush3.msra.mxu1 %v179_v26  ;;  %v174_v34 = vld [vmem:[#allocation2 + $0x60] sm:$0xff] }
  0x16   :  { %334 = vmatpush3.msra.mxu0 %v39_v4  ;;  %356 = vmatprep.subr.mxu1 %v419_v0  ;;  %v301_v47 = vld [vmem:[%s513_s3 + $0x1] sm:$0x1] }
  0x17   :  { %335 = vmatprep.subr.mxu0 %v419_v0  ;;  %357 = vmatpush3.msra.mxu1 %v178_v28 }
  0x18   :  { %336 = vmatpush3.msra.mxu0 %v38_v5  ;;  %358 = vmatprep.subr.mxu1 %v419_v0 }
  0x19   :  { %337 = vmatprep.subr.mxu0 %v419_v0  ;;  %359 = vmatpush3.msra.mxu1 %v177_v30 }
  0x1a   :  { %338 = vmatpush3.msra.mxu0 %v37_v6  ;;  %360 = vmatprep.subr.mxu1 %v419_v0 }
  0x1b   :  { %339 = vmatprep.subr.mxu0 %v419_v0  ;;  %361 = vmatpush3.msra.mxu1 %v176_v31 }
  0x1c   :  { %340 = vmatpush3.msra.mxu0 %v36_v7  ;;  %362 = vmatprep.subr.mxu1 %v419_v0 }
  0x1d   :  { %341 = vmatprep.subr.mxu0 %v419_v0  ;;  %363 = vmatpush3.msra.mxu1 %v175_v33 }
  0x1e   :  { %342 = vmatpush3.msra.mxu0 %v35_v8  ;;  %364 = vmatprep.subr.mxu1 %v419_v0 }
  0x1f   :  { %343 = vmatprep.subr.mxu0 %v419_v0  ;;  %365 = vmatpush3.msra.mxu1 %v174_v34 }
  0x20   :  { %344 = vmatpush3.msra.mxu0 %v34_v9  ;;  %366 = vmatprep.subr.mxu1 %v419_v0 }
  0x21   :  { %345 = vmatprep.subr.mxu0 %v419_v0  ;;  %367 = vmatpush3.msra.mxu1 %v173_v35 }
  0x22   :  { %346 = vmatpush3.msra.mxu0 %v33_v10  ;;  %368 = vmatprep.subr.mxu1 %v419_v0 }
  0x23   :  { %348 = vmatmul.mubr.msk.f32.vlgmr.msra.gmra.mxu0 %vm44_vm1, %v32_v11  ;;  %369 = vmatpush3.msra.mxu1 %v172_v36 }
  0xe3   :  { %v114_v13 = vpop.f32.mrf.mxu0 }
  0xe4   :  { %v115_v14 = vadd.f32 %v114_v13, %v43_v12 }
  0xe5   :  { %v349_v15 = vpop.f32.mrf.mxu0 }
  0xe6   :  { %125 = vrot.lane.b32.xlu0 %v115_v14, %s421_s25  ;;  %v297_v16 = vmul.f32 -1.442695, %v115_v14 }
  0xe8   :  { %382 = vpow2.f32 %v297_v16 }
  0xf5   :  { %v383_v17 = vpop.eup %382 }
  0xf6   :  { %v121_v18 = vadd.f32 1.0, %v383_v17 }
  0xf8   :  { %384 = vrcp.f32 %v121_v18 }
 0x105   :  { %v385_v19 = vpop.eup %384 }
 0x106   :  { %v135_v38 = vsub.f32 1.0, %v385_v19 }
 0x158   :  { %v126_v20 = vpop.permute.xlu0 %125 }
 0x159   :  { %v128_v21 = vmul.f32 %v385_v19, %v126_v20 }
 0x15b   :  { %130 = vrot.lane.b32.xlu0 %v128_v21, %s422_s0 }
 0x1cd   :  { %v131_v22 = vpop.permute.xlu0 %130 }
 0x1ce   :  { %v133_v23 = vadd.f32 %v131_v22, %v115_v14 }
 0x1d0   :  { %386 = vtanh.f32 %v133_v23 }
 0x1dd   :  { %v387_v27 = vpop.eup %386 }
 0x1de   :  { %137 = vrot.lane.b32.xlu1 %v387_v27, %s423_s26 }
 0x1e2   :  { %146 = vrot.lane.b32.xlu1 %v298_v29, %s421_s25 }
 0x1e6   :  { %164 = vrot.lane.b32.xlu1 %v300_v32, %s424_s5 }
 0x250   :  { %v138_v37 = vpop.permute.xlu1 %137 }
 0x251   :  { %v140_v40 = vmul.f32 %v138_v37, %v135_v38 }
 0x254   :  { %v147_v39 = vpop.permute.xlu1 %146 }
 0x255   :  { %v149_v41 = vmul.f32 %v385_v19, %v147_v39 }
 0x257   :  { %v150_v42 = vadd.f32 %v149_v41, %v140_v40 }
 0x258   :  { %v165_v43 = vpop.permute.xlu1 %164 }
 0x259   :  { %152 = vrot.lane.b32.xlu0 %v150_v42, %s423_s26 }
 0x2cb   :  { %v153_v44 = vpop.permute.xlu0 %152 }
 0x2cc   :  { %156 = vst.msk [vmem:[%s514_s4] sm:$0x1] %vm155_vm2, %v153_v44  ;;  %v168_v45 = vsel %vm167_vm3, %v153_v44, 0.0 }
 0x2cd   :  { %v170_v46 = vsel %vm169_vm4, %v168_v45, %v165_v43 }
 0x2ce   :  { %371 = vmatmul.mubr.msk.f32.vlgmr.msra.gmra.mxu1 %vm44_vm1, %v170_v46 }
 0x38e   :  { %v253_v48 = vpop.f32.mrf.mxu1 }
 0x38f   :  { %v254_v49 = vadd.f32 %v301_v47, %v253_v48 }
 0x390   :  { %v372_v50 = vpop.f32.mrf.mxu1 }
 0x391   :  { %264 = vrot.lane.b32.xlu0 %v254_v49, %s421_s25  ;;  %v303_v51 = vmul.f32 -1.442695, %v254_v49 }
 0x393   :  { %388 = vpow2.f32 %v303_v51 }
 0x3a0   :  { %v389_v52 = vpop.eup %388 }
 0x3a1   :  { %v260_v53 = vadd.f32 1.0, %v389_v52 }
 0x3a3   :  { %390 = vrcp.f32 %v260_v53 }
 0x3b0   :  { %v391_v54 = vpop.eup %390 }
 0x3b1   :  { %v274_v61 = vsub.f32 1.0, %v391_v54 }
 0x403   :  { %v265_v55 = vpop.permute.xlu0 %264 }
 0x404   :  { %v267_v56 = vmul.f32 %v391_v54, %v265_v55 }
 0x406   :  { %269 = vrot.lane.b32.xlu1 %v267_v56, %s422_s0 }
 0x40a   :  { %280 = vrot.lane.b32.xlu1 %v300_v32, %s421_s25 }
 0x478   :  { %v270_v57 = vpop.permute.xlu1 %269 }
 0x479   :  { %v272_v58 = vadd.f32 %v270_v57, %v254_v49 }
 0x47b   :  { %392 = vtanh.f32 %v272_v58 }
 0x47c   :  { %v281_v60 = vpop.permute.xlu1 %280 }
 0x47d   :  { %v283_v63 = vmul.f32 %v391_v54, %v281_v60 }
 0x488   :  { %v393_v59 = vpop.eup %392 }
 0x489   :  { %276 = vrot.lane.b32.xlu0 %v393_v59, %s423_s26 }
 0x4fb   :  { %v277_v62 = vpop.permute.xlu0 %276 }
 0x4fc   :  { %v279_v0 = vmul.f32 %v277_v62, %v274_v61 }
 0x4fe   :  { %v284_v1 = vadd.f32 %v283_v63, %v279_v0 }
 0x500   :  { %286 = vrot.lane.b32.xlu0 %v284_v1, %s423_s26 }
 0x572   :  { %v287_v2 = vpop.permute.xlu0 %286 }
 0x573   :  { %304 = vst.msk [vmem:[%s514_s4 + $0x1] sm:$0x1] %vm155_vm2, %v287_v2 }
 0x574   :  { %295 = vsyncpa [#allocation3], 1 }

</bundles_post_ra>
